<compile_context>
chip_gen: v6e
topology: v6e:2x2x1
jax: 0.10.0
libtpu: 0.0.40
codegen_flags: <defaults>
</compile_context>

<pallas_src>
import functools

import jax
import jax.numpy as jnp
from jax.experimental import pallas as pl
from jax.experimental.pallas import tpu as pltpu


def _absa_kernel(num_classes,
                 cls_ref, wp_ref, bp_ref, wh_ref, bh_ref,
                 out0_ref, out1_ref, out2_ref):
    # ---- stand-in BERT pooler: tanh(cls @ Wp + bp), bf16 MXU / f32 accum ----
    cls_bf16 = cls_ref[...].astype(jnp.bfloat16)                 # [TB, H]
    pooler = jnp.tanh(
        jnp.dot(cls_bf16, wp_ref[...], preferred_element_type=jnp.float32)
        + bp_ref[...]
    )                                                            # [TB, H] f32

    # ---- fused classifier heads: one MXU pass against [H, 2 + 2C] ----------
    logits = (jnp.dot(pooler.astype(jnp.bfloat16), wh_ref[...],
                      preferred_element_type=jnp.float32)
              + bh_ref[...])                                     # [TB, K] f32

    def softmax(z):  # numerically stable softmax along dim=1, all f32
        m = jnp.max(z, axis=1, keepdims=True)
        e = jnp.exp(z - m)
        return e / jnp.sum(e, axis=1, keepdims=True)

    c = num_classes
    out0_ref[...] = softmax(logits[:, 0:2])                 # classifier_0
    out1_ref[...] = softmax(logits[:, 2:2 + c])             # classifier_1
    out2_ref[...] = softmax(logits[:, 2 + c:2 + 2 * c])     # classifier_2


def absa_forward(x, segment_ids, attention_mask, params,
                 sa=True, absa=True, block_b=256):
    """x: [B, S, H] float32 embeddings.  Returns (out_0, out_1, out_2)."""
    del segment_ids, attention_mask  # consumed only by the (external) BERT
    B, S, H = x.shape
    C = params["w1"].shape[1]
    K = 2 + 2 * C

    # ---- batch tile: as large as fits, multiple of 8 (sublane aligned) ----
    TB = min(block_b, B)
    if TB % 8 != 0 and B >= 8:
        TB = (TB // 8) * 8 or 8
    nb = pl.cdiv(B, TB)

    # ---- CLS row DMA'd directly from x when the lane dim allows it --------
    if H % 128 == 0:
        # free trailing-dim collapse: row-block i, column-block 0 == x[:, 0, :]
        cls_in = x.reshape(B, S * H)
    else:
        # fall back to an XLA-side slice when H is not lane-aligned
        cls_in = x[:, 0, :]
    cls_spec = pl.BlockSpec((TB, H), lambda i: (i, 0))

    # ---- fused head weights [H, K] = [w0 | w1 | w2], bf16 for the MXU ------
    w_heads = jnp.concatenate(
        [params["w0"], params["w1"], params["w2"]], axis=1).astype(jnp.bfloat16)
    b_heads = jnp.concatenate(
        [params["b0"], params["b1"], params["b2"]], axis=1).astype(jnp.float32)
    wp = params["wp"].astype(jnp.bfloat16)
    bp = params["bp"].astype(jnp.float32)

    # ---- VMEM budget (double-buffered tiles + resident weights) -----------
    vmem_bytes = (2 * TB * H * 4                # double-buffered cls tile (f32)
                  + H * H * 2 + H * K * 2       # resident bf16 weights
                  + (H + K) * 4                 # biases
                  + 2 * TB * (2 + 2 * C) * 4    # double-buffered outputs
                  + 2 * TB * (H + K) * 4)       # compute intermediates headroom
    vmem_limit = int(min(max(2 * vmem_bytes, 4 * 1024 * 1024), 48 * 1024 * 1024))

    cost = pl.CostEstimate(
        flops=2 * B * H * (H + K),
        transcendentals=B * (H + K),
        bytes_accessed=(B * H * 4 + H * H * 2 + H * K * 2 + (H + K) * 4
                        + B * (2 + 2 * C) * 4),
    )

    out0, out1, out2 = pl.pallas_call(
        functools.partial(_absa_kernel, C),
        grid=(nb,),
        in_specs=[
            cls_spec,                                      # CLS rows, tiled
            pl.BlockSpec((H, H), lambda i: (0, 0)),        # Wp   (resident)
            pl.BlockSpec((1, H), lambda i: (0, 0)),        # bp   (resident)
            pl.BlockSpec((H, K), lambda i: (0, 0)),        # W0|W1|W2 (resident)
            pl.BlockSpec((1, K), lambda i: (0, 0)),        # b0|b1|b2 (resident)
        ],
        out_specs=(
            pl.BlockSpec((TB, 2), lambda i: (i, 0)),
            pl.BlockSpec((TB, C), lambda i: (i, 0)),
            pl.BlockSpec((TB, C), lambda i: (i, 0)),
        ),
        out_shape=(
            jax.ShapeDtypeStruct((B, 2), jnp.float32),
            jax.ShapeDtypeStruct((B, C), jnp.float32),
            jax.ShapeDtypeStruct((B, C), jnp.float32),
        ),
        compiler_params=pltpu.CompilerParams(
            dimension_semantics=("parallel",),
            vmem_limit_bytes=vmem_limit,
        ),
        cost_estimate=cost,
    )(cls_in, wp, bp, w_heads, b_heads)

    return (out0 if sa else None,
            out1 if absa else None,
            out2 if absa else None)


def init_params(key, hidden_size, num_classes):
    ks = jax.random.split(key, 8)
    s = 0.02
    return {
        # stand-in BERT pooler dense
        "wp": s * jax.random.normal(ks[0], (hidden_size, hidden_size), jnp.float32),
        "bp": s * jax.random.normal(ks[1], (1, hidden_size), jnp.float32),
        # classifier_0: Linear(hidden, 2)
        "w0": s * jax.random.normal(ks[2], (hidden_size, 2), jnp.float32),
        "b0": s * jax.random.normal(ks[3], (1, 2), jnp.float32),
        # classifier_1: Linear(hidden, num_classes)
        "w1": s * jax.random.normal(ks[4], (hidden_size, num_classes), jnp.float32),
        "b1": s * jax.random.normal(ks[5], (1, num_classes), jnp.float32),
        # classifier_2: Linear(hidden, num_classes)
        "w2": s * jax.random.normal(ks[6], (hidden_size, num_classes), jnp.float32),
        "b2": s * jax.random.normal(ks[7], (1, num_classes), jnp.float32),
    }


if __name__ == "__main__":
    # small but lane-aligned hidden so the direct-CLS-DMA path is exercised,
    # and B > TB so the batch grid actually tiles.
    B, S, H, C = 16, 8, 128, 3
    key = jax.random.PRNGKey(0)
    kx, kp = jax.random.split(key)

    x = jax.random.normal(kx, (B, S, H), jnp.float32)
    segment_ids = jnp.zeros((B, S), jnp.int32)
    attention_mask = jnp.ones((B, S), jnp.float32)
    params = init_params(kp, H, C)

    fwd = jax.jit(functools.partial(absa_forward, block_b=8))
    out_0, out_1, out_2 = fwd(x, segment_ids, attention_mask, params)
    jax.block_until_ready((out_0, out_1, out_2))

    # ---- checks ------------------------------------------------------------
    assert out_0.shape == (B, 2) and out_1.shape == (B, C) and out_2.shape == (B, C)
    assert jnp.allclose(jnp.sum(out_0, axis=1), 1.0, atol=1e-5)
    assert jnp.allclose(jnp.sum(out_1, axis=1), 1.0, atol=1e-5)
    assert jnp.allclose(jnp.sum(out_2, axis=1), 1.0, atol=1e-5)

    # plain-JAX f32 reference (kernel uses bf16 matmuls -> loose tolerance)
    cls = x[:, 0, :]
    pooler = jnp.tanh(cls @ params["wp"] + params["bp"])
    ref0 = jax.nn.softmax(pooler @ params["w0"] + params["b0"], axis=1)
    ref1 = jax.nn.softmax(pooler @ params["w1"] + params["b1"], axis=1)
    ref2 = jax.nn.softmax(pooler @ params["w2"] + params["b2"], axis=1)
    assert jnp.allclose(out_0, ref0, atol=2e-2)
    assert jnp.allclose(out_1, ref1, atol=2e-2)
    assert jnp.allclose(out_2, ref2, atol=2e-2)

    print("KERNEL_OK")
</pallas_src>

<mosaic_0001>
module attributes {stable_mosaic.version = 11 : i64} {
  func.func @_absa_kernel(%arg0: i32, %arg1: memref<8x128xf32, #tpu.memory_space<vmem>>, %arg2: memref<128x128xbf16, #tpu.memory_space<vmem>>, %arg3: memref<1x128xf32, #tpu.memory_space<vmem>>, %arg4: memref<128x8xbf16, #tpu.memory_space<vmem>>, %arg5: memref<1x8xf32, #tpu.memory_space<vmem>>, %arg6: memref<8x2xf32, #tpu.memory_space<vmem>>, %arg7: memref<8x3xf32, #tpu.memory_space<vmem>>, %arg8: memref<8x3xf32, #tpu.memory_space<vmem>>) attributes {dimension_semantics = [#tpu.dimension_semantics<parallel>], iteration_bounds = array<i64: 2>, scalar_prefetch = 0 : i64, scratch_operands = 0 : i64, tpu.core_type = #tpu.core_type<tc>, window_params = [{transform_indices = @transform_0, window_bounds = array<i64: 8, 128>}, {pipeline_mode = #tpu.pipeline_mode<synchronous>, transform_indices = @transform_1, window_bounds = array<i64: 128, 128>}, {pipeline_mode = #tpu.pipeline_mode<synchronous>, transform_indices = @transform_2, window_bounds = array<i64: 1, 128>}, {pipeline_mode = #tpu.pipeline_mode<synchronous>, transform_indices = @transform_3, window_bounds = array<i64: 128, 8>}, {pipeline_mode = #tpu.pipeline_mode<synchronous>, transform_indices = @transform_4, window_bounds = array<i64: 1, 8>}, {transform_indices = @transform_5, window_bounds = array<i64: 8, 2>}, {transform_indices = @transform_6, window_bounds = array<i64: 8, 3>}, {transform_indices = @transform_7, window_bounds = array<i64: 8, 3>}]} {
    %c0 = arith.constant 0 : index
    %c0_0 = arith.constant 0 : index
    %0 = vector.load %arg1[%c0, %c0_0] : memref<8x128xf32, #tpu.memory_space<vmem>>, vector<8x128xf32>
    %1 = arith.truncf %0 : vector<8x128xf32> to vector<8x128xbf16>
    %c0_1 = arith.constant 0 : index
    %c0_2 = arith.constant 0 : index
    %2 = vector.load %arg2[%c0_1, %c0_2] : memref<128x128xbf16, #tpu.memory_space<vmem>>, vector<128x128xbf16>
    %cst = arith.constant dense<0.000000e+00> : vector<8x128xf32>
    %3 = tpu.matmul %1, %2, %cst {dimension_numbers = #tpu.dot_dimension_numbers<[1], [0], [0], [1], [0, 0, 1, 1], [], []>} : vector<8x128xbf16>, vector<128x128xbf16>, vector<8x128xf32> -> vector<8x128xf32>
    %c0_3 = arith.constant 0 : index
    %c0_4 = arith.constant 0 : index
    %4 = vector.load %arg3[%c0_3, %c0_4] : memref<1x128xf32, #tpu.memory_space<vmem>>, vector<1x128xf32>
    %5 = vector.broadcast %4 : vector<1x128xf32> to vector<8x128xf32>
    %6 = arith.addf %3, %5 : vector<8x128xf32>
    %7 = math.tanh %6 : vector<8x128xf32>
    %8 = arith.truncf %7 : vector<8x128xf32> to vector<8x128xbf16>
    %c0_5 = arith.constant 0 : index
    %c0_6 = arith.constant 0 : index
    %9 = vector.load %arg4[%c0_5, %c0_6] : memref<128x8xbf16, #tpu.memory_space<vmem>>, vector<128x8xbf16>
    %cst_7 = arith.constant dense<0.000000e+00> : vector<8x8xf32>
    %10 = tpu.matmul %8, %9, %cst_7 {dimension_numbers = #tpu.dot_dimension_numbers<[1], [0], [0], [1], [0, 0, 1, 1], [], []>} : vector<8x128xbf16>, vector<128x8xbf16>, vector<8x8xf32> -> vector<8x8xf32>
    %c0_8 = arith.constant 0 : index
    %c0_9 = arith.constant 0 : index
    %11 = vector.load %arg5[%c0_8, %c0_9] : memref<1x8xf32, #tpu.memory_space<vmem>>, vector<1x8xf32>
    %12 = vector.broadcast %11 : vector<1x8xf32> to vector<8x8xf32>
    %13 = arith.addf %10, %12 : vector<8x8xf32>
    %14 = vector.extract_strided_slice %13 {offsets = [0, 0], sizes = [8, 2], strides = [1, 1]} : vector<8x8xf32> to vector<8x2xf32>
    %cst_10 = arith.constant dense<0xFF800000> : vector<8xf32>
    %15 = vector.multi_reduction <maximumf>, %14, %cst_10 [1] : vector<8x2xf32> to vector<8xf32>
    %16 = vector.shape_cast %15 : vector<8xf32> to vector<8x1xf32>
    %17 = vector.broadcast %16 : vector<8x1xf32> to vector<8x2xf32>
    %18 = arith.subf %14, %17 : vector<8x2xf32>
    %19 = math.exp %18 : vector<8x2xf32>
    %cst_11 = arith.constant dense<0.000000e+00> : vector<8xf32>
    %20 = vector.multi_reduction <add>, %19, %cst_11 [1] : vector<8x2xf32> to vector<8xf32>
    %21 = vector.shape_cast %20 : vector<8xf32> to vector<8x1xf32>
    %22 = vector.broadcast %21 : vector<8x1xf32> to vector<8x2xf32>
    %23 = arith.divf %19, %22 : vector<8x2xf32>
    %c0_12 = arith.constant 0 : index
    %c0_13 = arith.constant 0 : index
    %24 = vector.load %arg6[%c0_12, %c0_13] : memref<8x2xf32, #tpu.memory_space<vmem>>, vector<8x2xf32>
    tpu.vector_store %arg6[%c0_12, %c0_13], %23 {strides = array<i32>} : memref<8x2xf32, #tpu.memory_space<vmem>>, vector<8x2xf32>,
    %25 = vector.extract_strided_slice %13 {offsets = [0, 2], sizes = [8, 3], strides = [1, 1]} : vector<8x8xf32> to vector<8x3xf32>
    %cst_14 = arith.constant dense<0xFF800000> : vector<8xf32>
    %26 = vector.multi_reduction <maximumf>, %25, %cst_14 [1] : vector<8x3xf32> to vector<8xf32>
    %27 = vector.shape_cast %26 : vector<8xf32> to vector<8x1xf32>
    %28 = vector.broadcast %27 : vector<8x1xf32> to vector<8x3xf32>
    %29 = arith.subf %25, %28 : vector<8x3xf32>
    %30 = math.exp %29 : vector<8x3xf32>
    %cst_15 = arith.constant dense<0.000000e+00> : vector<8xf32>
    %31 = vector.multi_reduction <add>, %30, %cst_15 [1] : vector<8x3xf32> to vector<8xf32>
    %32 = vector.shape_cast %31 : vector<8xf32> to vector<8x1xf32>
    %33 = vector.broadcast %32 : vector<8x1xf32> to vector<8x3xf32>
    %34 = arith.divf %30, %33 : vector<8x3xf32>
    %c0_16 = arith.constant 0 : index
    %c0_17 = arith.constant 0 : index
    %35 = vector.load %arg7[%c0_16, %c0_17] : memref<8x3xf32, #tpu.memory_space<vmem>>, vector<8x3xf32>
    tpu.vector_store %arg7[%c0_16, %c0_17], %34 {strides = array<i32>} : memref<8x3xf32, #tpu.memory_space<vmem>>, vector<8x3xf32>,
    %36 = vector.extract_strided_slice %13 {offsets = [0, 5], sizes = [8, 3], strides = [1, 1]} : vector<8x8xf32> to vector<8x3xf32>
    %cst_18 = arith.constant dense<0xFF800000> : vector<8xf32>
    %37 = vector.multi_reduction <maximumf>, %36, %cst_18 [1] : vector<8x3xf32> to vector<8xf32>
    %38 = vector.shape_cast %37 : vector<8xf32> to vector<8x1xf32>
    %39 = vector.broadcast %38 : vector<8x1xf32> to vector<8x3xf32>
    %40 = arith.subf %36, %39 : vector<8x3xf32>
    %41 = math.exp %40 : vector<8x3xf32>
    %cst_19 = arith.constant dense<0.000000e+00> : vector<8xf32>
    %42 = vector.multi_reduction <add>, %41, %cst_19 [1] : vector<8x3xf32> to vector<8xf32>
    %43 = vector.shape_cast %42 : vector<8xf32> to vector<8x1xf32>
    %44 = vector.broadcast %43 : vector<8x1xf32> to vector<8x3xf32>
    %45 = arith.divf %41, %44 : vector<8x3xf32>
    %c0_20 = arith.constant 0 : index
    %c0_21 = arith.constant 0 : index
    %46 = vector.load %arg8[%c0_20, %c0_21] : memref<8x3xf32, #tpu.memory_space<vmem>>, vector<8x3xf32>
    tpu.vector_store %arg8[%c0_20, %c0_21], %45 {strides = array<i32>} : memref<8x3xf32, #tpu.memory_space<vmem>>, vector<8x3xf32>,
    return
  }
  func.func @transform_0(%arg0: i32) -> (i32, i32) {
    %c0_i32 = arith.constant 0 : i32
    %c0_i32_0 = arith.constant 0 : i32
    return %arg0, %c0_i32 : i32, i32
  }
  func.func @transform_1(%arg0: i32) -> (i32, i32) {
    %c0_i32 = arith.constant 0 : i32
    %c0_i32_0 = arith.constant 0 : i32
    %c0_i32_1 = arith.constant 0 : i32
    return %c0_i32, %c0_i32_0 : i32, i32
  }
  func.func @transform_2(%arg0: i32) -> (i32, i32) {
    %c0_i32 = arith.constant 0 : i32
    %c0_i32_0 = arith.constant 0 : i32
    %c0_i32_1 = arith.constant 0 : i32
    return %c0_i32, %c0_i32_0 : i32, i32
  }
  func.func @transform_3(%arg0: i32) -> (i32, i32) {
    %c0_i32 = arith.constant 0 : i32
    %c0_i32_0 = arith.constant 0 : i32
    %c0_i32_1 = arith.constant 0 : i32
    return %c0_i32, %c0_i32_0 : i32, i32
  }
  func.func @transform_4(%arg0: i32) -> (i32, i32) {
    %c0_i32 = arith.constant 0 : i32
    %c0_i32_0 = arith.constant 0 : i32
    %c0_i32_1 = arith.constant 0 : i32
    return %c0_i32, %c0_i32_0 : i32, i32
  }
  func.func @transform_5(%arg0: i32) -> (i32, i32) {
    %c0_i32 = arith.constant 0 : i32
    %c0_i32_0 = arith.constant 0 : i32
    return %arg0, %c0_i32 : i32, i32
  }
  func.func @transform_6(%arg0: i32) -> (i32, i32) {
    %c0_i32 = arith.constant 0 : i32
    %c0_i32_0 = arith.constant 0 : i32
    return %arg0, %c0_i32 : i32, i32
  }
  func.func @transform_7(%arg0: i32) -> (i32, i32) {
    %c0_i32 = arith.constant 0 : i32
    %c0_i32_0 = arith.constant 0 : i32
    return %arg0, %c0_i32 : i32, i32
  }
}

</mosaic_0001>

<bundles_post_ra>
// kernel: absa_forward.1
= control target key start
LH: loop header
LB: loop body
LE: loop exit
PB: predicated region body
PF: predicated region fallthrough
CT: control target
= control target key end

     0   :  { %s879_s24 = smov 0   ;;  %s971_s0 = inlined_call_operand.vmem [shape: f32[16,1024], index: 0, kind: input, shape index: {}]   ;;  %s972_s1 = inlined_call_operand.vmem [shape: bf16[128,128], index: 1, kind: input, shape index: {}]   ;;  %s973_s2 = inlined_call_operand.vmem [shape: f32[1,128], index: 2, kind: input, shape index: {}]   ;;  %s974_s3 = inlined_call_operand.vmem [shape: bf16[128,8], index: 3, kind: input, shape index: {}]   ;;  %s975_s4 = inlined_call_operand.vmem [shape: f32[1,8], index: 4, kind: input, shape index: {}]   ;;  %s976_s5 = inlined_call_operand.vmem [shape: f32[16,2], index: 5, kind: output, shape index: {0}]   ;;  %s977_s6 = inlined_call_operand.vmem [shape: f32[16,3], index: 6, kind: output, shape index: {1}]   ;;  %s978_s7 = inlined_call_operand.vmem [shape: f32[16,3], index: 7, kind: output, shape index: {2}]  }
   0x1 LB: > { %s696_s25 = sadd.s32 4294967295, %s833_s24   ;;  %p700_p0 = scmp.ge.s32.totalorder %s833_s24, 1  ;;  %s833_s24 = sphi %s879_s24, %s18_s24  }
   0x2   : > { %p242_p1 = scmp.lt.s32.totalorder %s833_s24, 3 }
   0x4   : > { %p243_p2 = pnand %p700_p0, %p242_p1 }
   0x5   : > { %p281_p3 = scmp.lt.s32.totalorder (!%p243_p2), %s696_s25, 1  ;;  %s837_s22 = smov (!%p243_p2), 126  }
   0x6   : > { %246 = sbr.rel (%p243_p2) target bundleno = 997 (0x3e5), region = 40  ;;  %s838_s23 = smov (!%p243_p2), 123  }
   0xb   : > { %v797_v0 = vld [vmem:[%s972_s1 + $0x38] sm:$0xff]   ;;  %v835_v1 = vmov 0.0   ;;  %v798_v2 = vld [vmem:[%s972_s1 + $0x30] sm:$0xff]   ;;  %vm836_vm0 = vmmov 0   ;;  %v799_v3 = vld [vmem:[%s972_s1 + $0x28] sm:$0xff]   ;;  %s980_s25 = smov (!%p281_p3, %s696_s25), 1 }
   0xc   : > { %745 = vmatprep.subr.bf16.mxu0 %v835_v1  ;;  %765 = vmatprep.subr.bf16.mxu1 %v835_v1  ;;  %v805_v4 = vld [vmem:[%s974_s3 + $0x38] sm:$0xff]   ;;  %v800_v5 = vld [vmem:[%s972_s1 + $0x20] sm:$0xff]   ;;  %v806_v6 = vld [vmem:[%s974_s3 + $0x30] sm:$0xff]   ;;  %s726_s21 = sshll.u32 %s980_s25, 6  ;;  %vm538_vm1 = vcmask 39952   ;;  %vm560_vm2 = vcmask 64552  }
   0xd   : > { %746 = vmatpush3.bf16.msra.mxu0 %v797_v0  ;;  %761 = vmatprep.mubr.msk.bf16.mxu0 %vm836_vm0, %v835_v1  ;;  %v801_v7 = vld [vmem:[%s972_s1 + $0x18] sm:$0xff]   ;;  %v807_v8 = vld [vmem:[%s974_s3 + $0x28] sm:$0xff]   ;;  %v802_v9 = vld [vmem:[%s972_s1 + $0x10] sm:$0xff]   ;;  %s285_s28 = scalar_lea.vmem %s971_s0, %s726_s21  ;;  %vm525_vm3 = vcmask 15360   ;;  %vm549_vm4 = vcmask 23552   ;;  %s703_s26 = sshll.u32 %s980_s25, 3 }
   0xe   : > { %747 = vmatprep.subr.bf16.mxu0 %v835_v1  ;;  %781 = vmatprep.mubr.msk.bf16.mxu1 %vm836_vm0, %v835_v1  ;;  %v803_v10 = vld [vmem:[%s972_s1 + $0x8] sm:$0xff]   ;;  %v804_v11 = vld [vmem:[%s972_s1] sm:$0xff]   ;;  %v809_v15 = vld [vmem:[%s974_s3 + $0x18] sm:$0xff]   ;;  %s289_s29 = scalar_lea.vmem %s976_s5, %s703_s26  ;;  %s293_s9 = scalar_lea.vmem %s977_s6, %s703_s26 }
   0xf   : > { %766 = vmatpush3.bf16.msra.mxu1 %v805_v4  ;;  %v299_v12 = vld [vmem:[%s285_s28] sm:$0xff]  ;;  %v810_v16 = vld [vmem:[%s974_s3 + $0x10] sm:$0xff]   ;;  %v811_v17 = vld [vmem:[%s974_s3 + $0x8] sm:$0xff]   ;;  %s297_s25 = scalar_lea.vmem %s978_s7, %s703_s26 }
  0x10   : > { %767 = vmatprep.subr.bf16.mxu1 %v835_v1  ;;  %v300_v13 = vpack.c.bf16 %v299_v12, %v299_v12  ;;  %v808_v14 = vld [vmem:[%s974_s3 + $0x20] sm:$0xff]  }
  0x11   : > { %748 = vmatpush3.bf16.msra.mxu0 %v798_v2  ;;  %v812_v18 = vld [vmem:[%s974_s3] sm:$0xff]  }
  0x12   : > { %749 = vmatprep.subr.bf16.mxu0 %v835_v1  ;;  %v706_v19 = vld [vmem:[%s973_s2] ss:$0 sm:$0xff] }
  0x13   : > { %768 = vmatpush3.bf16.msra.mxu1 %v806_v6  ;;  %v715_v27 = vld [vmem:[%s975_s4] ss:$0 sm:$0xff] }
  0x14   : > { %769 = vmatprep.subr.bf16.mxu1 %v835_v1 }
  0x15   : > { %750 = vmatpush3.bf16.msra.mxu0 %v799_v3 }
  0x16   : > { %751 = vmatprep.subr.bf16.mxu0 %v835_v1 }
  0x17   : > { %770 = vmatpush3.bf16.msra.mxu1 %v807_v8 }
  0x18   : > { %771 = vmatprep.subr.bf16.mxu1 %v835_v1 }
  0x19   : > { %752 = vmatpush3.bf16.msra.mxu0 %v800_v5 }
  0x1a   : > { %753 = vmatprep.subr.bf16.mxu0 %v835_v1 }
  0x1b   : > { %772 = vmatpush3.bf16.msra.mxu1 %v808_v14 }
  0x1c   : > { %773 = vmatprep.subr.bf16.mxu1 %v835_v1 }
  0x1d   : > { %754 = vmatpush3.bf16.msra.mxu0 %v801_v7 }
  0x1e   : > { %755 = vmatprep.subr.bf16.mxu0 %v835_v1 }
  0x1f   : > { %774 = vmatpush3.bf16.msra.mxu1 %v809_v15 }
  0x20   : > { %775 = vmatprep.subr.bf16.mxu1 %v835_v1 }
  0x21   : > { %756 = vmatpush3.bf16.msra.mxu0 %v802_v9 }
  0x22   : > { %757 = vmatprep.subr.bf16.mxu0 %v835_v1 }
  0x23   : > { %776 = vmatpush3.bf16.msra.mxu1 %v810_v16 }
  0x24   : > { %777 = vmatprep.subr.bf16.mxu1 %v835_v1 }
  0x25   : > { %758 = vmatpush3.bf16.msra.mxu0 %v803_v10 }
  0x26   : > { %759 = vmatprep.subr.bf16.mxu0 %v835_v1 }
  0x27   : > { %778 = vmatpush3.bf16.msra.mxu1 %v811_v17 }
  0x28   : > { %779 = vmatprep.subr.bf16.mxu1 %v835_v1 }
  0x29   : > { %760 = vmatpush3.bf16.msra.mxu0 %v804_v11 }
  0x2b   : > { %780 = vmatpush3.bf16.msra.mxu1 %v812_v18 }
  0x2c   : > { %762 = vmatmul.mubr.bf16.vlgmr.msra.gmra.mxu0 %v300_v13 }
  0xec   : > { %v406_v20 = vpop.f32.mrf.mxu0 }
  0xed   : > { %v407_v21 = vadd.f32 %v706_v19, %v406_v20 }
  0xee   : > { %v763_v22 = vpop.f32.mrf.mxu0 }
  0xef   : > { %813 = vtanh.f32 %v407_v21 }
  0xf0   : > { %v409_v23 = vpop.f32.mrf.mxu0 }
  0xf2   : > { %v764_v24 = vpop.f32.mrf.mxu0 }
  0xfc   : > { %v814_v25 = vpop.eup %813 }
  0xfd   : > { %v413_v26 = vpack.c.bf16 %v814_v25, %v814_v25 }
  0xff   : > { %782 = vmatmul.mubr.bf16.vlgmr.msra.gmra.mxu1 %v413_v26 }
 0x1bf   : > { %v519_v28 = vpop.f32.mrf.mxu1 }
 0x1c0   : > { %v520_v29 = vadd.f32 %v715_v27, %v519_v28 }
 0x1c1   : > { %v783_v30 = vpop.f32.mrf.mxu1 }
 0x1c2   : > { %v539_v31 = vsel %vm538_vm1, %v520_v29, -inf  ;;  %v561_v34 = vsel %vm560_vm2, %v520_v29, -inf  ;;  %v526_v35 = vsel %vm525_vm3, %v520_v29, -inf }
 0x1c3   : > { %540 = vmax.xlane.f32.xlu0 %v539_v31  ;;  %v522_v32 = vpop.f32.mrf.mxu1 }
 0x1c5   : > { %v784_v33 = vpop.f32.mrf.mxu1 }
 0x1c7   : > { %562 = vmax.xlane.f32.xlu0 %v561_v34 }
 0x1cb   : > { %527 = vmax.xlane.f32.xlu0 %v526_v35 }
 0x24c   : > { %v541_v36 = vpop.xlane.xlu0 %540 }
 0x24d   : > { %v542_v37 = vsub.f32 %v520_v29, %v541_v36 }
 0x24f   : > { %v543_v38 = vmul.f32 1.442695, %v542_v37 }
 0x250   : > { %v563_v39 = vpop.xlane.xlu0 %562 }
 0x251   : > { %815 = vpow2.f32 %v543_v38  ;;  %v564_v40 = vsub.f32 %v520_v29, %v563_v39 }
 0x253   : > { %v565_v41 = vmul.f32 1.442695, %v564_v40 }
 0x254   : > { %v528_v44 = vpop.xlane.xlu0 %527 }
 0x255   : > { %817 = vpow2.f32 %v565_v41  ;;  %v529_v45 = vsub.f32 %v520_v29, %v528_v44 }
 0x257   : > { %v530_v46 = vmul.f32 1.442695, %v529_v45 }
 0x259   : > { %819 = vpow2.f32 %v530_v46 }
 0x25e   : > { %v816_v42 = vpop.eup %815 }
 0x25f   : > { %546 = vrot.lane.b32.xlu1 %v816_v42, %s837_s22 }
 0x262   : > { %v818_v43 = vpop.eup %817 }
 0x263   : > { %568 = vrot.lane.b32.xlu1 %v818_v43, %s838_s23 }
 0x266   : > { %v820_v51 = vpop.eup %819 }
 0x267   : > { %v532_v52 = vsel %vm525_vm3, %v820_v51, 0.0 }
 0x2d1   : > { %v547_v47 = vpop.permute.xlu1 %546 }
 0x2d2   : > { %v550_v48 = vsel %vm549_vm4, %v547_v47, 0.0 }
 0x2d3   : > { %551 = vadd.xlane.f32.xlu1 %v550_v48 }
 0x2d5   : > { %v569_v49 = vpop.permute.xlu1 %568 }
 0x2d6   : > { %v571_v50 = vsel %vm549_vm4, %v569_v49, 0.0 }
 0x2d7   : > { %572 = vadd.xlane.f32.xlu0 %v571_v50 }
 0x2db   : > { %533 = vadd.xlane.f32.xlu0 %v532_v52 }
 0x35c   : > { %v552_v53 = vpop.xlane.xlu1 %551 }
 0x35d   : > { %821 = vrcp.f32 %v552_v53 }
 0x360   : > { %v573_v54 = vpop.xlane.xlu0 %572 }
 0x361   : > { %823 = vrcp.f32 %v573_v54 }
 0x364   : > { %v534_v55 = vpop.xlane.xlu0 %533 }
 0x365   : > { %825 = vrcp.f32 %v534_v55 }
 0x36a   : > { %v822_v56 = vpop.eup %821 }
 0x36b   : > { %v554_v57 = vmul.f32 %v822_v56, %v816_v42 }
 0x36d   : > { %556 = vrot.lane.b32.xlu0 %v554_v57, %s837_s22 }
 0x36e   : > { %v824_v58 = vpop.eup %823 }
 0x36f   : > { %v575_v59 = vmul.f32 %v824_v58, %v818_v43 }
 0x371   : > { %577 = vrot.lane.b32.xlu0 %v575_v59, %s838_s23 }
 0x372   : > { %v826_v60 = vpop.eup %825 }
 0x373   : > { %v536_v61 = vmul.f32 %v826_v60, %v820_v51 }
 0x375   : > { %537 = vst.msk [vmem:[%s289_s29] sm:$0xff] %vm525_vm3, %v536_v61 }
 0x3df   : > { %v557_v62 = vpop.permute.xlu0 %556 }
 0x3e0   : > { %559 = vst.msk [vmem:[%s293_s9] sm:$0xff] %vm549_vm4, %v557_v62 }
 0x3e3   : > { %v578_v63 = vpop.permute.xlu0 %577 }
 0x3e4   : > { %580 = vst.msk [vmem:[%s297_s25] sm:$0xff] %vm549_vm4, %v578_v63 }
 0x3e5 PF: > { %s18_s24 = sadd.s32 1, %s833_s24  }
 0x3e6   : > { %p15_p4 = scmp.ge.s32.totalorder %s18_s24, 4  }
 0x3e8   :  { %17 = sbr.rel (!%p15_p4) target bundleno = 1 (0x1), region = 94 }

</bundles_post_ra>
